<compile_context>
chip_gen: v6e
topology: v6e:2x2x1
jax: 0.10.0
libtpu: 0.0.40
codegen_flags: <defaults>
</compile_context>

<pallas_src>
import jax
import jax.numpy as jnp
from jax import lax
from jax.experimental import pallas as pl
from jax.experimental.pallas import tpu as pltpu
import numpy as np


IN_H, IN_W, IN_C = 16, 16, 3
IN_FLAT = IN_H * IN_W * IN_C            # 768  (6 * 128 lanes -> lane dense)
H1_H = H1_W = (IN_H - 3) // 2 + 1       # 7
H1_C = 8
H1_FLAT = H1_H * H1_W * H1_C            # 392
H1_PAD = 512                            # pad 392 -> 4*128 lanes (zero cols/rows)
OUT_H = OUT_W = (H1_H - 3) // 2 + 1     # 3
OUT_C = 16
OUT_FLAT = OUT_C * OUT_H * OUT_W        # 144  (PyTorch NCHW flatten order)

MIN_TILE = 16                           # bf16 sublane packing (16, 128)


def _round_up(x, m):
    return (x + m - 1) // m * m


# ----------------------------- Pallas kernel -------------------------------
def _fused_convnet_kernel(x_ref, w1_ref, b1_ref, w2_ref, b2_ref, o_ref):
    """Whole ConvNet forward for one batch tile, entirely in VMEM.

    x_ref : (bt, 768)      bf16  raw pixel rows (flattened 16x16x3, HWC order)
    w1_ref: (768, 512)     bf16  conv1 folded into a dense matmul, already
                                 scaled by 1/255 (ImageReshape), cols in HWC
                                 order, zero-padded 392->512
    b1_ref: (1, 512)       f32   (padded cols are 0)
    w2_ref: (512, 144)     bf16  conv2 folded into a dense matmul, cols in
                                 (CO, OH, OW) order, zero rows for the padding
    b2_ref: (1, 144)       f32
    o_ref : (bt, 144)      bf16  == PyTorch ConvNet flattened output
    """
    # Conv1 (+ folded 1/255 rescale) + bias + ReLU: bf16 MXU, f32 accumulation.
    h1 = jnp.dot(x_ref[...], w1_ref[...], preferred_element_type=jnp.float32)
    h1 = jnp.maximum(h1 + b1_ref[...], 0.0)

    # Conv2 + bias + ReLU; columns already in (CO, OH, OW) flatten order, so
    # the store below is the final lane-dense 144-wide slab (no transpose).
    h2 = jnp.dot(h1.astype(jnp.bfloat16), w2_ref[...],
                 preferred_element_type=jnp.float32)
    h2 = jnp.maximum(h2 + b2_ref[...], 0.0)

    o_ref[...] = h2.astype(o_ref.dtype)


# ----------------------- weight folding (host-side, once) -------------------
def _fold_conv_to_dense(w_oihw, in_hw, in_c, stride, out_order):
    """Fold a VALID, strided Conv2d into a dense (H*W*Cin, OH*OW*Cout) matrix
    that acts on HWC-flattened image rows.  Pure numpy -> runs once per weight
    update, never inside the jit'd forward.

    out_order == "HWC": columns ordered (oh, ow, co)   (intermediate layout)
    out_order == "CHW": columns ordered (co, oh, ow)   (PyTorch NCHW flatten)
    """
    w = np.asarray(w_oihw, np.float32)
    CO, CI, KH, KW = w.shape
    H, W = in_hw
    OH = (H - KH) // stride + 1
    OW = (W - KW) // stride + 1
    oh, ow, co, kh, kw, ci = np.meshgrid(
        np.arange(OH), np.arange(OW), np.arange(CO),
        np.arange(KH), np.arange(KW), np.arange(CI), indexing="ij")
    rows = ((oh * stride + kh) * W + (ow * stride + kw)) * in_c + ci
    if out_order == "HWC":
        cols = (oh * OW + ow) * CO + co
    else:  # "CHW"
        cols = (co * OH + oh) * OW + ow
    dense = np.zeros((H * W * in_c, OH * OW * CO), np.float32)
    dense[rows.ravel(), cols.ravel()] = w[co, ci, kh, kw].ravel()
    return dense


def fold_params(params):
    """One-time prep of the Pallas-side weights.  Call this OUTSIDE jit,
    once per weight update, and pass the result into convnet_forward."""
    w1 = np.asarray(params["w1"], np.float32)
    b1 = np.asarray(params["b1"], np.float32)
    w2 = np.asarray(params["w2"], np.float32)
    b2 = np.asarray(params["b2"], np.float32)

    # conv1 dense fold, with ImageReshape's 1/255 folded into the weights
    # (w1 . x/255 == (w1/255) . x).
    w1d = _fold_conv_to_dense(w1, (IN_H, IN_W), IN_C, 2, "HWC") * (1.0 / 255.0)
    b1d = np.tile(b1, H1_H * H1_W).reshape(1, H1_FLAT)           # HWC col order
    # conv2 dense fold, columns in PyTorch NCHW flatten order.
    w2d = _fold_conv_to_dense(w2, (H1_H, H1_W), H1_C, 2, "CHW")
    b2d = np.repeat(b2, OUT_H * OUT_W).reshape(1, OUT_FLAT)      # CHW col order

    # Zero-pad hidden width 392 -> 512 so everything between the two dots is
    # lane-dense.  Padded h1 columns: 0*x + 0 bias -> ReLU -> 0, and w2d's
    # padded rows are 0 -> contribution is exactly 0.
    w1p = np.zeros((IN_FLAT, H1_PAD), np.float32); w1p[:, :H1_FLAT] = w1d
    b1p = np.zeros((1, H1_PAD), np.float32);       b1p[:, :H1_FLAT] = b1d
    w2p = np.zeros((H1_PAD, OUT_FLAT), np.float32); w2p[:H1_FLAT, :] = w2d

    return {
        "w1d": jnp.asarray(w1p, jnp.bfloat16),
        "b1d": jnp.asarray(b1p, jnp.float32),
        "w2d": jnp.asarray(w2p, jnp.bfloat16),
        "b2d": jnp.asarray(b2d, jnp.float32),
    }


# ------------------------------- forward ------------------------------------
def convnet_forward(x, folded, *, block_b=1024):
    """Equivalent of ConvNet.forward for channel-minor x of shape (..., 16, 16, 3).

    x may be uint8 pixels or float; `folded` comes from fold_params(params).
    Returns a bf16 array of shape (..., 144).
    """
    extra_dims = x.shape[:-3]
    assert x.shape[-3:] == (IN_H, IN_W, IN_C), x.shape
    # Flatten to pixel rows (pure reshape, HWC order) and narrow to bf16:
    # uint8 pixel values 0..255 are exact in bf16; halves (vs f32) the HBM
    # stream that dominated the kernel's runtime.
    xb = x.reshape((-1, IN_FLAT)).astype(jnp.bfloat16)
    b = xb.shape[0]

    # Batch tiling.  bt is a multiple of 16 (bf16 sublane packing).  For
    # batches that would otherwise be a single grid step, split into >=2 steps
    # so v7x's two TensorCores both get work under dimension_semantics.
    if b >= 2 * block_b:
        bt = block_b
    else:
        bt = min(block_b, max(MIN_TILE, _round_up((b + 1) // 2, MIN_TILE)))
    bp = _round_up(b, bt)
    if bp != b:
        xb = jnp.pad(xb, ((0, bp - b), (0, 0)))

    w1d, b1d, w2d, b2d = folded["w1d"], folded["b1d"], folded["w2d"], folded["b2d"]

    flops = 2 * bp * (IN_FLAT * H1_PAD + H1_PAD * OUT_FLAT)
    bytes_accessed = (bp * IN_FLAT * 2 + bp * OUT_FLAT * 2          # bf16 in/out
                      + w1d.size * 2 + w2d.size * 2                 # bf16 weights
                      + (H1_PAD + OUT_FLAT) * 4)                    # f32 biases

    out = pl.pallas_call(
        _fused_convnet_kernel,
        out_shape=jax.ShapeDtypeStruct((bp, OUT_FLAT), jnp.bfloat16),
        grid_spec=pltpu.PrefetchScalarGridSpec(
            num_scalar_prefetch=0,
            grid=(bp // bt,),
            in_specs=[
                pl.BlockSpec((bt, IN_FLAT), lambda i: (i, 0)),         # batch tile
                pl.BlockSpec((IN_FLAT, H1_PAD), lambda i: (0, 0)),     # VMEM-resident
                pl.BlockSpec((1, H1_PAD), lambda i: (0, 0)),
                pl.BlockSpec((H1_PAD, OUT_FLAT), lambda i: (0, 0)),
                pl.BlockSpec((1, OUT_FLAT), lambda i: (0, 0)),
            ],
            out_specs=pl.BlockSpec((bt, OUT_FLAT), lambda i: (i, 0)),  # 144-wide slab
        ),
        compiler_params=pltpu.CompilerParams(
            dimension_semantics=("parallel",),       # v7x: shard batch over 2 TCs
            vmem_limit_bytes=32 * 1024 * 1024,       # safe on v5e/v6e/v7x (64 MiB)
        ),
        cost_estimate=pl.CostEstimate(
            flops=flops, transcendentals=0, bytes_accessed=bytes_accessed),
    )(xb, w1d, b1d, w2d, b2d)

    out = out[:b]
    return out.reshape(*extra_dims, OUT_FLAT)


# ------------------------------ reference -----------------------------------
def _reference_forward(x, params):
    """Pure-JAX f32 reference (lax conv) to sanity-check the Pallas path."""
    extra_dims = x.shape[:-3]
    H, W, C = x.shape[-3:]
    xb = x.reshape((-1, H, W, C)).astype(jnp.float32) / 255.0
    dn = ("NHWC", "HWIO", "NHWC")
    w1 = jnp.transpose(params["w1"], (2, 3, 1, 0))
    w2 = jnp.transpose(params["w2"], (2, 3, 1, 0))
    h = lax.conv_general_dilated(xb, w1, (2, 2), "VALID", dimension_numbers=dn)
    h = jnp.maximum(h + params["b1"][None, None, None, :], 0.0)
    h = lax.conv_general_dilated(h, w2, (2, 2), "VALID", dimension_numbers=dn)
    h = jnp.maximum(h + params["b2"][None, None, None, :], 0.0)
    h = jnp.transpose(h, (0, 3, 1, 2))               # NHWC -> NCHW before flatten
    n = h.shape[1] * h.shape[2] * h.shape[3]
    return h.reshape(*extra_dims, n)


def init_params(key):
    """Deterministic synthetic weights matching the PyTorch layer shapes."""
    k1, k2, k3, k4 = jax.random.split(key, 4)
    s1 = 1.0 / np.sqrt(3 * 3 * 3)
    s2 = 1.0 / np.sqrt(8 * 3 * 3)
    return {
        "w1": jax.random.uniform(k1, (8, 3, 3, 3), jnp.float32, -s1, s1),
        "b1": jax.random.uniform(k2, (8,), jnp.float32, -s1, s1),
        "w2": jax.random.uniform(k3, (16, 8, 3, 3), jnp.float32, -s2, s2),
        "b2": jax.random.uniform(k4, (16,), jnp.float32, -s2, s2),
    }


# TODO(synk): ConvNet wraps an arbitrary nn.Sequential; only the canonical
# Conv(3->8,s2)+ReLU+Conv(8->16,s2)+ReLU instantiation is implemented here.
# TODO(synk): on v5e the dense fold's ~22x MAC inflation makes the MXU the
# ceiling; an in-kernel im2col for the first layer would be the next lever
# there (v6e/v7x have ample MXU slack and stay HBM-bound, so keep the fold).

if __name__ == "__main__":
    key = jax.random.PRNGKey(0)
    pkey, xkey, xkey2 = jax.random.split(key, 3)
    params = init_params(pkey)
    folded = fold_params(params)                    # hoisted out of the jit path
    fwd = jax.jit(convnet_forward, static_argnames="block_b")

    # bf16 MXU operands / bf16 output -> compare against f32 reference loosely.
    TOL = dict(rtol=5e-2, atol=5e-2)

    # (1) uint8 pixel batch (the typical ConvNet input; exact in bf16).
    x_u8 = jax.random.randint(xkey, (2, IN_H, IN_W, IN_C), 0, 256,
                              dtype=jnp.int32).astype(jnp.uint8)
    out = jax.block_until_ready(fwd(x_u8, folded))
    assert out.shape == (2, OUT_FLAT), out.shape
    ref = jax.block_until_ready(_reference_forward(x_u8, params))
    np.testing.assert_allclose(np.array(out, dtype=np.float32),
                               np.array(ref, dtype=np.float32), **TOL)

    # (2) 5-D (batch, sequence, H, W, C) float input; batch of 21 rows splits
    #     into a 2-step grid (VMEM-resident weights, both v7x TCs busy).
    x2 = jax.random.uniform(xkey2, (3, 7, IN_H, IN_W, IN_C), jnp.float32,
                            0.0, 255.0)
    out2 = jax.block_until_ready(fwd(x2, folded))
    assert out2.shape == (3, 7, OUT_FLAT), out2.shape
    ref2 = jax.block_until_ready(_reference_forward(x2, params))
    np.testing.assert_allclose(np.array(out2, dtype=np.float32),
                               np.array(ref2, dtype=np.float32), **TOL)

    print("KERNEL_OK")
</pallas_src>

<mosaic_0001>
module attributes {stable_mosaic.version = 11 : i64} {
  func.func @_fused_convnet_kernel(%arg0: i32, %arg1: memref<16x768xbf16, #tpu.memory_space<vmem>>, %arg2: memref<768x512xbf16, #tpu.memory_space<vmem>>, %arg3: memref<1x512xf32, #tpu.memory_space<vmem>>, %arg4: memref<512x144xbf16, #tpu.memory_space<vmem>>, %arg5: memref<1x144xf32, #tpu.memory_space<vmem>>, %arg6: memref<16x144xbf16, #tpu.memory_space<vmem>>) attributes {dimension_semantics = [#tpu.dimension_semantics<parallel>], iteration_bounds = array<i64: 1>, scalar_prefetch = 0 : i64, scratch_operands = 0 : i64, tpu.core_type = #tpu.core_type<tc>, window_params = [{transform_indices = @transform_0, window_bounds = array<i64: 16, 768>}, {pipeline_mode = #tpu.pipeline_mode<synchronous>, transform_indices = @transform_1, window_bounds = array<i64: 768, 512>}, {pipeline_mode = #tpu.pipeline_mode<synchronous>, transform_indices = @transform_2, window_bounds = array<i64: 1, 512>}, {pipeline_mode = #tpu.pipeline_mode<synchronous>, transform_indices = @transform_3, window_bounds = array<i64: 512, 144>}, {pipeline_mode = #tpu.pipeline_mode<synchronous>, transform_indices = @transform_4, window_bounds = array<i64: 1, 144>}, {transform_indices = @transform_5, window_bounds = array<i64: 16, 144>}]} {
    %c0 = arith.constant 0 : index
    %c0_0 = arith.constant 0 : index
    %0 = vector.load %arg1[%c0, %c0_0] : memref<16x768xbf16, #tpu.memory_space<vmem>>, vector<16x768xbf16>
    %c0_1 = arith.constant 0 : index
    %c0_2 = arith.constant 0 : index
    %1 = vector.load %arg2[%c0_1, %c0_2] : memref<768x512xbf16, #tpu.memory_space<vmem>>, vector<768x512xbf16>
    %cst = arith.constant dense<0.000000e+00> : vector<16x512xf32>
    %2 = tpu.matmul %0, %1, %cst {dimension_numbers = #tpu.dot_dimension_numbers<[1], [0], [0], [1], [0, 0, 1, 1], [], []>} : vector<16x768xbf16>, vector<768x512xbf16>, vector<16x512xf32> -> vector<16x512xf32>
    %c0_3 = arith.constant 0 : index
    %c0_4 = arith.constant 0 : index
    %3 = vector.load %arg3[%c0_3, %c0_4] : memref<1x512xf32, #tpu.memory_space<vmem>>, vector<1x512xf32>
    %4 = vector.broadcast %3 : vector<1x512xf32> to vector<16x512xf32>
    %5 = arith.addf %2, %4 : vector<16x512xf32>
    %cst_5 = arith.constant 0.000000e+00 : f32
    %6 = vector.broadcast %cst_5 : f32 to vector<16x512xf32>
    %7 = arith.maximumf %5, %6 : vector<16x512xf32>
    %8 = arith.truncf %7 : vector<16x512xf32> to vector<16x512xbf16>
    %c0_6 = arith.constant 0 : index
    %c0_7 = arith.constant 0 : index
    %9 = vector.load %arg4[%c0_6, %c0_7] : memref<512x144xbf16, #tpu.memory_space<vmem>>, vector<512x144xbf16>
    %cst_8 = arith.constant dense<0.000000e+00> : vector<16x144xf32>
    %10 = tpu.matmul %8, %9, %cst_8 {dimension_numbers = #tpu.dot_dimension_numbers<[1], [0], [0], [1], [0, 0, 1, 1], [], []>} : vector<16x512xbf16>, vector<512x144xbf16>, vector<16x144xf32> -> vector<16x144xf32>
    %c0_9 = arith.constant 0 : index
    %c0_10 = arith.constant 0 : index
    %11 = vector.load %arg5[%c0_9, %c0_10] : memref<1x144xf32, #tpu.memory_space<vmem>>, vector<1x144xf32>
    %12 = vector.broadcast %11 : vector<1x144xf32> to vector<16x144xf32>
    %13 = arith.addf %10, %12 : vector<16x144xf32>
    %cst_11 = arith.constant 0.000000e+00 : f32
    %14 = vector.broadcast %cst_11 : f32 to vector<16x144xf32>
    %15 = arith.maximumf %13, %14 : vector<16x144xf32>
    %16 = arith.truncf %15 : vector<16x144xf32> to vector<16x144xbf16>
    %c0_12 = arith.constant 0 : index
    %c0_13 = arith.constant 0 : index
    %17 = vector.load %arg6[%c0_12, %c0_13] : memref<16x144xbf16, #tpu.memory_space<vmem>>, vector<16x144xbf16>
    tpu.vector_store %arg6[%c0_12, %c0_13], %16 {strides = array<i32>} : memref<16x144xbf16, #tpu.memory_space<vmem>>, vector<16x144xbf16>,
    return
  }
  func.func @transform_0(%arg0: i32) -> (i32, i32) {
    %c0_i32 = arith.constant 0 : i32
    %c0_i32_0 = arith.constant 0 : i32
    return %arg0, %c0_i32 : i32, i32
  }
  func.func @transform_1(%arg0: i32) -> (i32, i32) {
    %c0_i32 = arith.constant 0 : i32
    %c0_i32_0 = arith.constant 0 : i32
    %c0_i32_1 = arith.constant 0 : i32
    return %c0_i32, %c0_i32_0 : i32, i32
  }
  func.func @transform_2(%arg0: i32) -> (i32, i32) {
    %c0_i32 = arith.constant 0 : i32
    %c0_i32_0 = arith.constant 0 : i32
    %c0_i32_1 = arith.constant 0 : i32
    return %c0_i32, %c0_i32_0 : i32, i32
  }
  func.func @transform_3(%arg0: i32) -> (i32, i32) {
    %c0_i32 = arith.constant 0 : i32
    %c0_i32_0 = arith.constant 0 : i32
    %c0_i32_1 = arith.constant 0 : i32
    return %c0_i32, %c0_i32_0 : i32, i32
  }
  func.func @transform_4(%arg0: i32) -> (i32, i32) {
    %c0_i32 = arith.constant 0 : i32
    %c0_i32_0 = arith.constant 0 : i32
    %c0_i32_1 = arith.constant 0 : i32
    return %c0_i32, %c0_i32_0 : i32, i32
  }
  func.func @transform_5(%arg0: i32) -> (i32, i32) {
    %c0_i32 = arith.constant 0 : i32
    %c0_i32_0 = arith.constant 0 : i32
    return %arg0, %c0_i32 : i32, i32
  }
}

</mosaic_0001>

<bundles_post_ra>
// kernel: convnet_forward.1
= control target key start
LH: loop header
LB: loop body
LE: loop exit
PB: predicated region body
PF: predicated region fallthrough
CT: control target
= control target key end

     0   :  { %10 = vsyncpa [#allocation3], 0  ;;  %s2706_s18 = smov [#allocation2]   ;;  %s2998_s0 = inlined_call_operand.vmem [shape: bf16[16,768], index: 0, kind: input, shape index: {}]   ;;  %s2999_s1 = inlined_call_operand.hbm [shape: bf16[768,512], index: 1, kind: input, shape index: {}]   ;;  %s3000_s2 = inlined_call_operand.vmem [shape: f32[1,512], index: 2, kind: input, shape index: {}]   ;;  %s3001_s3 = inlined_call_operand.vmem [shape: bf16[512,144], index: 3, kind: input, shape index: {}]   ;;  %s3002_s4 = inlined_call_operand.vmem [shape: f32[1,144], index: 4, kind: input, shape index: {}]   ;;  %s3003_s5 = inlined_call_operand.vmem [shape: bf16[16,144], index: 5, kind: output, shape index: {}]  }
   0x1   :  { %s18_s19 = sshll.u32 %s2706_s18, 4  ;;  %s19_s19 = int_to_ptr.vmem [resolvable:$true] %s18_s19 }
   0x2   :  { %s2692_s20 = scalar_lea.vmem %s19_s19, 24576  ;;  %p2697_p1 = scmp.lt.s32.totalorder %s19_s19, %s19_s19 }
   0x3   :  { %p2693_p0 = scmp.ne.s32.totalorder %s19_s19, %s2692_s20  ;;  %p2698_p2 = scmp.lt.s32.totalorder %s2692_s20, %s2692_s20 }
   0x5   :  { %p2699_p3 = por %p2698_p2, %p2697_p1 }
   0x7   :  { %p2700_p4 = pnand %p2699_p3, %p2693_p0 }
   0x9   :  { %2703 = shalt.err (!%p2700_p4)
}
   0xa   :  { %s2707_s21 = smov 256   ;;  %s2708_s22 = smov 16  }
   0xb   :  { %24 = dma.hbm_to_vmem [thread:$0]  %s2999_s1, 24576, %s19_s19, [#allocation3], %s2707_s21, %s2707_s21, %s2708_s22  }
   0xc   :  { %2704 = dma.done.wait [#allocation3], 24576  }
   0xd   :  { %2705 = vsyncadd [#allocation3], 4294942720  ;;  %v2291_v0 = vld [vmem:[#allocation2 + $0xe4] ss:$16 sps:$4 sm:$0xff]   ;;  %v2295_v2 = vld [vmem:[#allocation2 + $0xe0] ss:$16 sps:$4 sm:$0xff]  }
   0xe   :  { %v2293_v1 = vld [vmem:[#allocation2 + $0x2e4] ss:$16 sps:$4 sm:$0xff]   ;;  %1244 = vmatprep.subr.bf16.mxu0 %v2291_v0  ;;  %v2296_v3 = vld [vmem:[#allocation2 + $0x2e0] ss:$16 sps:$4 sm:$0xff]   ;;  %vm2012_vm0 = vcmask 1043456   ;;  %vm2013_vm1 = vcmask 130052  }
   0xf   :  { %1287 = vmatprep.subr.bf16.mxu1 %v2293_v1  ;;  %v2297_v4 = vld [vmem:[#allocation2 + $0xc4] ss:$16 sps:$4 sm:$0xff]   ;;  %1245 = vmatpush1.bf16.msra.mxu0 %v2295_v2  ;;  %v2301_v6 = vld [vmem:[#allocation2 + $0xc0] ss:$16 sps:$4 sm:$0xff]   ;;  %vm2014_vm2 = vmor %vm2013_vm1, %vm2012_vm0 }
  0x10   :  { %1288 = vmatpush1.bf16.msra.mxu1 %v2296_v3  ;;  %v2299_v5 = vld [vmem:[#allocation2 + $0x2c4] ss:$16 sps:$4 sm:$0xff]   ;;  %1246 = vmatprep.subr.bf16.mxu0 %v2297_v4  ;;  %v2302_v7 = vld [vmem:[#allocation2 + $0x2c0] ss:$16 sps:$4 sm:$0xff]   ;;  %v2398_v3 = vld [vmem:[#allocation2 + $0xec] ss:$16 sps:$4 sm:$0xff]  }
  0x11   :  { %1289 = vmatprep.subr.bf16.mxu1 %v2299_v5  ;;  %v2303_v8 = vld [vmem:[#allocation2 + $0xa4] ss:$16 sps:$4 sm:$0xff]   ;;  %v2307_v10 = vld [vmem:[#allocation2 + $0xa0] ss:$16 sps:$4 sm:$0xff]  }
  0x12   :  { %v2305_v9 = vld [vmem:[#allocation2 + $0x2a4] ss:$16 sps:$4 sm:$0xff]   ;;  %v2308_v11 = vld [vmem:[#allocation2 + $0x2a0] ss:$16 sps:$4 sm:$0xff]  }
  0x13   :  { %1247 = vmatpush1.bf16.msra.mxu0 %v2301_v6  ;;  %v2309_v12 = vld [vmem:[#allocation2 + $0x84] ss:$16 sps:$4 sm:$0xff]   ;;  %v2313_v14 = vld [vmem:[#allocation2 + $0x80] ss:$16 sps:$4 sm:$0xff]  }
  0x14   :  { %1290 = vmatpush1.bf16.msra.mxu1 %v2302_v7  ;;  %1248 = vmatprep.subr.bf16.mxu0 %v2303_v8  ;;  %v2311_v13 = vld [vmem:[#allocation2 + $0x284] ss:$16 sps:$4 sm:$0xff]   ;;  %v2314_v15 = vld [vmem:[#allocation2 + $0x280] ss:$16 sps:$4 sm:$0xff]   ;;  %v2396_v7 = vld [vmem:[#allocation2 + $0xe8] ss:$16 sps:$4 sm:$0xff]  }
  0x15   :  { %1291 = vmatprep.subr.bf16.mxu1 %v2305_v9  ;;  %v2315_v16 = vld [vmem:[#allocation2 + $0x64] ss:$16 sps:$4 sm:$0xff]   ;;  %v2319_v18 = vld [vmem:[#allocation2 + $0x60] ss:$16 sps:$4 sm:$0xff]   ;;  %v2404_v9 = vld [vmem:[#allocation2 + $0xcc] ss:$16 sps:$4 sm:$0xff]  }
  0x16   :  { %v2317_v17 = vld [vmem:[#allocation2 + $0x264] ss:$16 sps:$4 sm:$0xff]   ;;  %v2320_v19 = vld [vmem:[#allocation2 + $0x260] ss:$16 sps:$4 sm:$0xff]  }
  0x17   :  { %1249 = vmatpush1.bf16.msra.mxu0 %v2307_v10  ;;  %v2321_v20 = vld [vmem:[#allocation2 + $0x44] ss:$16 sps:$4 sm:$0xff]   ;;  %v2325_v22 = vld [vmem:[#allocation2 + $0x40] ss:$16 sps:$4 sm:$0xff]  }
  0x18   :  { %1292 = vmatpush1.bf16.msra.mxu1 %v2308_v11  ;;  %1250 = vmatprep.subr.bf16.mxu0 %v2309_v12  ;;  %v2323_v21 = vld [vmem:[#allocation2 + $0x244] ss:$16 sps:$4 sm:$0xff]   ;;  %v2326_v23 = vld [vmem:[#allocation2 + $0x240] ss:$16 sps:$4 sm:$0xff]   ;;  %v2402_v11 = vld [vmem:[#allocation2 + $0xc8] ss:$16 sps:$4 sm:$0xff]  }
  0x19   :  { %1293 = vmatprep.subr.bf16.mxu1 %v2311_v13  ;;  %v2327_v24 = vld [vmem:[#allocation2 + $0x24] ss:$16 sps:$4 sm:$0xff]   ;;  %v2331_v26 = vld [vmem:[#allocation2 + $0x20] ss:$16 sps:$4 sm:$0xff]   ;;  %v2410_v13 = vld [vmem:[#allocation2 + $0xac] ss:$16 sps:$4 sm:$0xff]  }
  0x1a   :  { %v2329_v25 = vld [vmem:[#allocation2 + $0x224] ss:$16 sps:$4 sm:$0xff]   ;;  %v2332_v27 = vld [vmem:[#allocation2 + $0x220] ss:$16 sps:$4 sm:$0xff]  }
  0x1b   :  { %1251 = vmatpush1.bf16.msra.mxu0 %v2313_v14  ;;  %v2333_v28 = vld [vmem:[#allocation2 + $0x4] ss:$16 sps:$4 sm:$0xff]   ;;  %v2337_v30 = vld [vmem:[#allocation2] ss:$16 sps:$4 sm:$0xff]  }
  0x1c   :  { %1294 = vmatpush1.bf16.msra.mxu1 %v2314_v15  ;;  %1252 = vmatprep.subr.bf16.mxu0 %v2315_v16  ;;  %v2335_v29 = vld [vmem:[#allocation2 + $0x204] ss:$16 sps:$4 sm:$0xff]   ;;  %v2338_v31 = vld [vmem:[#allocation2 + $0x200] ss:$16 sps:$4 sm:$0xff]   ;;  %v2408_v15 = vld [vmem:[#allocation2 + $0xa8] ss:$16 sps:$4 sm:$0xff]  }
  0x1d   :  { %1295 = vmatprep.subr.bf16.mxu1 %v2317_v17  ;;  %v2339_v32 = vld [vmem:[#allocation2 + $0x1e4] ss:$16 sps:$4 sm:$0xff]   ;;  %v2343_v34 = vld [vmem:[#allocation2 + $0x1e0] ss:$16 sps:$4 sm:$0xff]   ;;  %v2416_v17 = vld [vmem:[#allocation2 + $0x8c] ss:$16 sps:$4 sm:$0xff]  }
  0x1e   :  { %v2341_v33 = vld [vmem:[#allocation2 + $0x3e4] ss:$16 sps:$4 sm:$0xff]   ;;  %v2344_v35 = vld [vmem:[#allocation2 + $0x3e0] ss:$16 sps:$4 sm:$0xff]  }
  0x1f   :  { %1253 = vmatpush1.bf16.msra.mxu0 %v2319_v18  ;;  %v2345_v36 = vld [vmem:[#allocation2 + $0x1c4] ss:$16 sps:$4 sm:$0xff]   ;;  %v2349_v38 = vld [vmem:[#allocation2 + $0x1c0] ss:$16 sps:$4 sm:$0xff]  }
  0x20   :  { %1296 = vmatpush1.bf16.msra.mxu1 %v2320_v19  ;;  %1254 = vmatprep.subr.bf16.mxu0 %v2321_v20  ;;  %v2347_v37 = vld [vmem:[#allocation2 + $0x3c4] ss:$16 sps:$4 sm:$0xff]   ;;  %v2350_v39 = vld [vmem:[#allocation2 + $0x3c0] ss:$16 sps:$4 sm:$0xff]   ;;  %v2414_v19 = vld [vmem:[#allocation2 + $0x88] ss:$16 sps:$4 sm:$0xff]  }
  0x21   :  { %1297 = vmatprep.subr.bf16.mxu1 %v2323_v21  ;;  %v2351_v40 = vld [vmem:[#allocation2 + $0x1a4] ss:$16 sps:$4 sm:$0xff]   ;;  %v2355_v42 = vld [vmem:[#allocation2 + $0x1a0] ss:$16 sps:$4 sm:$0xff]   ;;  %v2422_v21 = vld [vmem:[#allocation2 + $0x6c] ss:$16 sps:$4 sm:$0xff]  }
  0x22   :  { %v2353_v41 = vld [vmem:[#allocation2 + $0x3a4] ss:$16 sps:$4 sm:$0xff]   ;;  %v2356_v43 = vld [vmem:[#allocation2 + $0x3a0] ss:$16 sps:$4 sm:$0xff]  }
  0x23   :  { %1255 = vmatpush1.bf16.msra.mxu0 %v2325_v22  ;;  %v2357_v44 = vld [vmem:[#allocation2 + $0x184] ss:$16 sps:$4 sm:$0xff]   ;;  %v2361_v46 = vld [vmem:[#allocation2 + $0x180] ss:$16 sps:$4 sm:$0xff]  }
  0x24   :  { %1298 = vmatpush1.bf16.msra.mxu1 %v2326_v23  ;;  %1256 = vmatprep.subr.bf16.mxu0 %v2327_v24  ;;  %v2359_v45 = vld [vmem:[#allocation2 + $0x384] ss:$16 sps:$4 sm:$0xff]   ;;  %v2362_v47 = vld [vmem:[#allocation2 + $0x380] ss:$16 sps:$4 sm:$0xff]   ;;  %v2420_v23 = vld [vmem:[#allocation2 + $0x68] ss:$16 sps:$4 sm:$0xff]  }
  0x25   :  { %1299 = vmatprep.subr.bf16.mxu1 %v2329_v25  ;;  %v2363_v48 = vld [vmem:[#allocation2 + $0x164] ss:$16 sps:$4 sm:$0xff]   ;;  %v2367_v52 = vld [vmem:[#allocation2 + $0x160] ss:$16 sps:$4 sm:$0xff]   ;;  %v2428_v25 = vld [vmem:[#allocation2 + $0x4c] ss:$16 sps:$4 sm:$0xff]  }
  0x26   :  { %v2389_v49 = vld [vmem:[%s2998_s0 + $0x4] ss:$24 sps:$4 sm:$0xff]   ;;  %v2368_v53 = vld [vmem:[#allocation2 + $0x360] ss:$16 sps:$4 sm:$0xff]  }
  0x27   :  { %1257 = vmatpush1.bf16.msra.mxu0 %v2331_v26  ;;  %v2365_v50 = vld [vmem:[#allocation2 + $0x364] ss:$16 sps:$4 sm:$0xff]   ;;  %1276 = vmatprep.mubr.bf16.mxu0 %v2389_v49  ;;  %v2373_v56 = vld [vmem:[#allocation2 + $0x140] ss:$16 sps:$4 sm:$0xff]  }
  0x28   :  { %1300 = vmatpush1.bf16.msra.mxu1 %v2332_v27  ;;  %1258 = vmatprep.subr.bf16.mxu0 %v2333_v28  ;;  %v2748_v51 = vld [vmem:[%s2998_s0 + $0xc] ss:$24 sps:$4 sm:$0xff]   ;;  %v2374_v57 = vld [vmem:[#allocation2 + $0x340] ss:$16 sps:$4 sm:$0xff]   ;;  %v2426_v27 = vld [vmem:[#allocation2 + $0x48] ss:$16 sps:$4 sm:$0xff]  }
  0x29   :  { %1301 = vmatprep.subr.bf16.mxu1 %v2335_v29  ;;  %1319 = vmatprep.mubr.bf16.mxu1 %v2748_v51  ;;  %v2369_v54 = vld [vmem:[#allocation2 + $0x144] ss:$16 sps:$4 sm:$0xff]   ;;  %v2379_v60 = vld [vmem:[#allocation2 + $0x120] ss:$16 sps:$4 sm:$0xff]   ;;  %v2434_v29 = vld [vmem:[#allocation2 + $0x2c] ss:$16 sps:$4 sm:$0xff]  }
  0x2a   :  { %v2371_v55 = vld [vmem:[#allocation2 + $0x344] ss:$16 sps:$4 sm:$0xff]   ;;  %v2380_v61 = vld [vmem:[#allocation2 + $0x320] ss:$16 sps:$4 sm:$0xff]  }
  0x2b   :  { %1259 = vmatpush1.bf16.msra.mxu0 %v2337_v30  ;;  %v2375_v58 = vld [vmem:[#allocation2 + $0x124] ss:$16 sps:$4 sm:$0xff]   ;;  %v2385_v0 = vld [vmem:[#allocation2 + $0x100] ss:$16 sps:$4 sm:$0xff]  }
  0x2c   :  { %1302 = vmatpush1.bf16.msra.mxu1 %v2338_v31  ;;  %1260 = vmatprep.subr.bf16.mxu0 %v2339_v32  ;;  %v2377_v59 = vld [vmem:[#allocation2 + $0x324] ss:$16 sps:$4 sm:$0xff]   ;;  %v2386_v1 = vld [vmem:[#allocation2 + $0x300] ss:$16 sps:$4 sm:$0xff]   ;;  %v2432_v31 = vld [vmem:[#allocation2 + $0x28] ss:$16 sps:$4 sm:$0xff]  }
  0x2d   :  { %1303 = vmatprep.subr.bf16.mxu1 %v2341_v33  ;;  %v2381_v62 = vld [vmem:[#allocation2 + $0x104] ss:$16 sps:$4 sm:$0xff]   ;;  %v2754_v4 = vld [vmem:[%s2998_s0] ss:$24 sps:$4 sm:$0xff]   ;;  %v2440_v33 = vld [vmem:[#allocation2 + $0xc] ss:$16 sps:$4 sm:$0xff]  }
  0x2e   :  { %v2383_v63 = vld [vmem:[#allocation2 + $0x304] ss:$16 sps:$4 sm:$0xff]   ;;  %v2759_v5 = vld [vmem:[%s2998_s0 + $0x8] ss:$24 sps:$4 sm:$0xff]  }
  0x2f   :  { %1261 = vmatpush2.bf16.msra.mxu0 %v2343_v34  ;;  %v2395_v2 = vld [vmem:[#allocation2 + $0x4e4] ss:$16 sps:$4 sm:$0xff]   ;;  %v2393_v6 = vld [vmem:[#allocation2 + $0x4e0] ss:$16 sps:$4 sm:$0xff]  }
  0x30   :  { %1304 = vmatpush2.bf16.msra.mxu1 %v2344_v35  ;;  %1262 = vmatprep.subr.bf16.mxu0 %v2345_v36  ;;  %v2401_v8 = vld [vmem:[#allocation2 + $0x4c4] ss:$16 sps:$4 sm:$0xff]   ;;  %v2399_v10 = vld [vmem:[#allocation2 + $0x4c0] ss:$16 sps:$4 sm:$0xff]   ;;  %v2438_v36 = vld [vmem:[#allocation2 + $0x8] ss:$16 sps:$4 sm:$0xff]  }
  0x31   :  { %1305 = vmatprep.subr.bf16.mxu1 %v2347_v37  ;;  %v2407_v12 = vld [vmem:[#allocation2 + $0x4a4] ss:$16 sps:$4 sm:$0xff]   ;;  %v2405_v14 = vld [vmem:[#allocation2 + $0x4a0] ss:$16 sps:$4 sm:$0xff]  }
  0x32   :  { %v2413_v16 = vld [vmem:[#allocation2 + $0x484] ss:$16 sps:$4 sm:$0xff]   ;;  %v2411_v18 = vld [vmem:[#allocation2 + $0x480] ss:$16 sps:$4 sm:$0xff]  }
  0x33   :  { %1263 = vmatpush2.bf16.msra.mxu0 %v2349_v38  ;;  %v2419_v20 = vld [vmem:[#allocation2 + $0x464] ss:$16 sps:$4 sm:$0xff]   ;;  %v2417_v22 = vld [vmem:[#allocation2 + $0x460] ss:$16 sps:$4 sm:$0xff]   ;;  %v2446_v38 = vld [vmem:[#allocation2 + $0x1ec] ss:$16 sps:$4 sm:$0xff]  }
  0x34   :  { %1306 = vmatpush2.bf16.msra.mxu1 %v2350_v39  ;;  %1264 = vmatprep.subr.bf16.mxu0 %v2351_v40  ;;  %v2425_v24 = vld [vmem:[#allocation2 + $0x444] ss:$16 sps:$4 sm:$0xff]   ;;  %v2423_v26 = vld [vmem:[#allocation2 + $0x440] ss:$16 sps:$4 sm:$0xff]   ;;  %v2444_v40 = vld [vmem:[#allocation2 + $0x1e8] ss:$16 sps:$4 sm:$0xff]  }
  0x35   :  { %1307 = vmatprep.subr.bf16.mxu1 %v2353_v41  ;;  %v2431_v28 = vld [vmem:[#allocation2 + $0x424] ss:$16 sps:$4 sm:$0xff]   ;;  %v2429_v30 = vld [vmem:[#allocation2 + $0x420] ss:$16 sps:$4 sm:$0xff]  }
  0x36   :  { %v2437_v32 = vld [vmem:[#allocation2 + $0x404] ss:$16 sps:$4 sm:$0xff]   ;;  %v2435_v35 = vld [vmem:[#allocation2 + $0x400] ss:$16 sps:$4 sm:$0xff]  }
  0x37   :  { %1265 = vmatpush2.bf16.msra.mxu0 %v2355_v42  ;;  %v2766_v34 = vld [vmem:[%s2998_s0 + $0x14] ss:$24 sps:$4 sm:$0xff]   ;;  %v2441_v39 = vld [vmem:[#allocation2 + $0x5e0] ss:$16 sps:$4 sm:$0xff]  }
  0x38   :  { %1308 = vmatpush2.bf16.msra.mxu1 %v2356_v43  ;;  %1266 = vmatprep.subr.bf16.mxu0 %v2357_v44  ;;  %v2443_v37 = vld [vmem:[#allocation2 + $0x5e4] ss:$16 sps:$4 sm:$0xff]   ;;  %v2452_v42 = vld [vmem:[#allocation2 + $0x1cc] ss:$16 sps:$4 sm:$0xff]   ;;  %v2447_v43 = vld [vmem:[#allocation2 + $0x5c0] ss:$16 sps:$4 sm:$0xff]  }
  0x39   :  { %1309 = vmatprep.subr.bf16.mxu1 %v2359_v45  ;;  %v2449_v41 = vld [vmem:[#allocation2 + $0x5c4] ss:$16 sps:$4 sm:$0xff]   ;;  %v2450_v44 = vld [vmem:[#allocation2 + $0x1c8] ss:$16 sps:$4 sm:$0xff]  }
  0x3a   :  { %v2455_v45 = vld [vmem:[#allocation2 + $0x5a4] ss:$16 sps:$4 sm:$0xff]  }
  0x3b   :  { %1267 = vmatpush2.bf16.msra.mxu0 %v2361_v46  ;;  %v2458_v46 = vld [vmem:[#allocation2 + $0x1ac] ss:$16 sps:$4 sm:$0xff]  }
  0x3c   :  { %1310 = vmatpush2.bf16.msra.mxu1 %v2362_v47  ;;  %1268 = vmatprep.subr.bf16.mxu0 %v2363_v48  ;;  %v2453_v47 = vld [vmem:[#allocation2 + $0x5a0] ss:$16 sps:$4 sm:$0xff]   ;;  %v2456_v48 = vld [vmem:[#allocation2 + $0x1a8] ss:$16 sps:$4 sm:$0xff]  }
  0x3d   :  { %1311 = vmatprep.subr.bf16.mxu1 %v2365_v50  ;;  %v2464_v50 = vld [vmem:[#allocation2 + $0x18c] ss:$16 sps:$4 sm:$0xff]  }
  0x3f   :  { %1269 = vmatpush2.bf16.msra.mxu0 %v2367_v52  ;;  %v2459_v52 = vld [vmem:[#allocation2 + $0x580] ss:$16 sps:$4 sm:$0xff]  }
  0x40   :  { %1312 = vmatpush2.bf16.msra.mxu1 %v2368_v53  ;;  %1270 = vmatprep.subr.bf16.mxu0 %v2369_v54  ;;  %v2462_v53 = vld [vmem:[#allocation2 + $0x188] ss:$16 sps:$4 sm:$0xff]   ;;  %v2467_v54 = vld [vmem:[#allocation2 + $0x564] ss:$16 sps:$4 sm:$0xff]  }
  0x41   :  { %1313 = vmatprep.subr.bf16.mxu1 %v2371_v55  ;;  %v2470_v55 = vld [vmem:[#allocation2 + $0x16c] ss:$16 sps:$4 sm:$0xff]  }
  0x43   :  { %1271 = vmatpush2.bf16.msra.mxu0 %v2373_v56  ;;  %v2465_v56 = vld [vmem:[#allocation2 + $0x560] ss:$16 sps:$4 sm:$0xff]  }
  0x44   :  { %1314 = vmatpush2.bf16.msra.mxu1 %v2374_v57  ;;  %1272 = vmatprep.subr.bf16.mxu0 %v2375_v58  ;;  %v2468_v57 = vld [vmem:[#allocation2 + $0x168] ss:$16 sps:$4 sm:$0xff]   ;;  %v2473_v58 = vld [vmem:[#allocation2 + $0x544] ss:$16 sps:$4 sm:$0xff]  }
  0x45   :  { %1315 = vmatprep.subr.bf16.mxu1 %v2377_v59  ;;  %v2476_v59 = vld [vmem:[#allocation2 + $0x14c] ss:$16 sps:$4 sm:$0xff]  }
  0x47   :  { %1273 = vmatpush2.bf16.msra.mxu0 %v2379_v60  ;;  %v2471_v60 = vld [vmem:[#allocation2 + $0x540] ss:$16 sps:$4 sm:$0xff]  }
  0x48   :  { %1316 = vmatpush2.bf16.msra.mxu1 %v2380_v61  ;;  %1274 = vmatprep.subr.bf16.mxu0 %v2381_v62  ;;  %v2474_v61 = vld [vmem:[#allocation2 + $0x148] ss:$16 sps:$4 sm:$0xff]   ;;  %v2479_v62 = vld [vmem:[#allocation2 + $0x524] ss:$16 sps:$4 sm:$0xff]  }
  0x49   :  { %1317 = vmatprep.subr.bf16.mxu1 %v2383_v63  ;;  %v2482_v63 = vld [vmem:[#allocation2 + $0x12c] ss:$16 sps:$4 sm:$0xff]  }
  0x4b   :  { %1275 = vmatpush2.bf16.msra.mxu0 %v2385_v0  ;;  %v2477_v0 = vld [vmem:[#allocation2 + $0x520] ss:$16 sps:$4 sm:$0xff]  }
  0x4c   :  { %1318 = vmatpush2.bf16.msra.mxu1 %v2386_v1  ;;  %1330 = vmatprep.subr.bf16.mxu0 %v2395_v2  ;;  %v2480_v1 = vld [vmem:[#allocation2 + $0x128] ss:$16 sps:$4 sm:$0xff]   ;;  %v2485_v2 = vld [vmem:[#allocation2 + $0x504] ss:$16 sps:$4 sm:$0xff]  }
  0x4d   :  { %1373 = vmatprep.subr.bf16.mxu1 %v2398_v3  ;;  %v2488_v3 = vld [vmem:[#allocation2 + $0x10c] ss:$16 sps:$4 sm:$0xff]  }
  0x4e   :  { %1277 = vmatmul.mubr.bf16.vlgmr.msra.gmra.mxu0 %v2754_v4 }
  0x4f   :  { %1320 = vmatmul.mubr.bf16.vlgmr.msra.gmra.mxu1 %v2759_v5  ;;  %1331 = vmatpush1.bf16.msra.mxu0 %v2393_v6  ;;  %v2483_v6 = vld [vmem:[#allocation2 + $0x500] ss:$16 sps:$4 sm:$0xff]  }
  0x50   :  { %1374 = vmatpush1.bf16.msra.mxu1 %v2396_v7  ;;  %1332 = vmatprep.subr.bf16.mxu0 %v2401_v8  ;;  %v2486_v7 = vld [vmem:[#allocation2 + $0x108] ss:$16 sps:$4 sm:$0xff]   ;;  %v2494_v8 = vld [vmem:[#allocation2 + $0x2ec] ss:$16 sps:$4 sm:$0xff]  }
  0x51   :  { %1375 = vmatprep.subr.bf16.mxu1 %v2404_v9  ;;  %1405 = vmatprep.mubr.bf16.mxu1 %v2389_v49  ;;  %v2461_v49 = vld [vmem:[#allocation2 + $0x584] ss:$16 sps:$4 sm:$0xff]   ;;  %v2497_v9 = vld [vmem:[#allocation2 + $0x4ec] ss:$16 sps:$4 sm:$0xff]  }
  0x52   :  { %1362 = vmatprep.mubr.bf16.mxu0 %v2766_v34 }
  0x53   :  { %1333 = vmatpush1.bf16.msra.mxu0 %v2399_v10  ;;  %v2772_v10 = vld [vmem:[%s2998_s0 + $0x10] ss:$24 sps:$4 sm:$0xff]  }
  0x54   :  { %1376 = vmatpush1.bf16.msra.mxu1 %v2402_v11  ;;  %1334 = vmatprep.subr.bf16.mxu0 %v2407_v12  ;;  %v2492_v11 = vld [vmem:[#allocation2 + $0x2e8] ss:$16 sps:$4 sm:$0xff]  }
  0x55   :  { %1377 = vmatprep.subr.bf16.mxu1 %v2410_v13  ;;  %v2495_v12 = vld [vmem:[#allocation2 + $0x4e8] ss:$16 sps:$4 sm:$0xff]   ;;  %v2500_v13 = vld [vmem:[#allocation2 + $0x2cc] ss:$16 sps:$4 sm:$0xff]  }
  0x57   :  { %1335 = vmatpush1.bf16.msra.mxu0 %v2405_v14  ;;  %v2503_v14 = vld [vmem:[#allocation2 + $0x4cc] ss:$16 sps:$4 sm:$0xff]  }
  0x58   :  { %1378 = vmatpush1.bf16.msra.mxu1 %v2408_v15  ;;  %1336 = vmatprep.subr.bf16.mxu0 %v2413_v16  ;;  %v2498_v15 = vld [vmem:[#allocation2 + $0x2c8] ss:$16 sps:$4 sm:$0xff]  }
  0x59   :  { %1379 = vmatprep.subr.bf16.mxu1 %v2416_v17  ;;  %v2501_v16 = vld [vmem:[#allocation2 + $0x4c8] ss:$16 sps:$4 sm:$0xff]   ;;  %v2506_v17 = vld [vmem:[#allocation2 + $0x2ac] ss:$16 sps:$4 sm:$0xff]  }
  0x5b   :  { %1337 = vmatpush1.bf16.msra.mxu0 %v2411_v18  ;;  %v2509_v18 = vld [vmem:[#allocation2 + $0x4ac] ss:$16 sps:$4 sm:$0xff]  }
  0x5c   :  { %1380 = vmatpush1.bf16.msra.mxu1 %v2414_v19  ;;  %1338 = vmatprep.subr.bf16.mxu0 %v2419_v20  ;;  %v2504_v19 = vld [vmem:[#allocation2 + $0x2a8] ss:$16 sps:$4 sm:$0xff]  }
  0x5d   :  { %1381 = vmatprep.subr.bf16.mxu1 %v2422_v21  ;;  %v2507_v20 = vld [vmem:[#allocation2 + $0x4a8] ss:$16 sps:$4 sm:$0xff]   ;;  %v2512_v21 = vld [vmem:[#allocation2 + $0x28c] ss:$16 sps:$4 sm:$0xff]  }
  0x5f   :  { %1339 = vmatpush1.bf16.msra.mxu0 %v2417_v22  ;;  %v2515_v22 = vld [vmem:[#allocation2 + $0x48c] ss:$16 sps:$4 sm:$0xff]  }
  0x60   :  { %1382 = vmatpush1.bf16.msra.mxu1 %v2420_v23  ;;  %1340 = vmatprep.subr.bf16.mxu0 %v2425_v24  ;;  %v2513_v23 = vld [vmem:[#allocation2 + $0x488] ss:$16 sps:$4 sm:$0xff]   ;;  %v2518_v24 = vld [vmem:[#allocation2 + $0x26c] ss:$16 sps:$4 sm:$0xff]  }
  0x61   :  { %1383 = vmatprep.subr.bf16.mxu1 %v2428_v25  ;;  %v2521_v25 = vld [vmem:[#allocation2 + $0x46c] ss:$16 sps:$4 sm:$0xff]  }
  0x63   :  { %1341 = vmatpush1.bf16.msra.mxu0 %v2423_v26  ;;  %v2516_v26 = vld [vmem:[#allocation2 + $0x268] ss:$16 sps:$4 sm:$0xff]  }
  0x64   :  { %1384 = vmatpush1.bf16.msra.mxu1 %v2426_v27  ;;  %1342 = vmatprep.subr.bf16.mxu0 %v2431_v28  ;;  %v2524_v27 = vld [vmem:[#allocation2 + $0x24c] ss:$16 sps:$4 sm:$0xff]  }
  0x65   :  { %1385 = vmatprep.subr.bf16.mxu1 %v2434_v29  ;;  %v2527_v28 = vld [vmem:[#allocation2 + $0x44c] ss:$16 sps:$4 sm:$0xff]   ;;  %v2522_v29 = vld [vmem:[#allocation2 + $0x248] ss:$16 sps:$4 sm:$0xff]  }
  0x67   :  { %1343 = vmatpush1.bf16.msra.mxu0 %v2429_v30  ;;  %v2525_v30 = vld [vmem:[#allocation2 + $0x448] ss:$16 sps:$4 sm:$0xff]  }
  0x68   :  { %1386 = vmatpush1.bf16.msra.mxu1 %v2432_v31  ;;  %1344 = vmatprep.subr.bf16.mxu0 %v2437_v32  ;;  %v2530_v31 = vld [vmem:[#allocation2 + $0x22c] ss:$16 sps:$4 sm:$0xff]  }
  0x69   :  { %1387 = vmatprep.subr.bf16.mxu1 %v2440_v33  ;;  %v2533_v32 = vld [vmem:[#allocation2 + $0x42c] ss:$16 sps:$4 sm:$0xff]   ;;  %v2528_v33 = vld [vmem:[#allocation2 + $0x228] ss:$16 sps:$4 sm:$0xff]  }
  0x6b   :  { %1345 = vmatpush1.bf16.msra.mxu0 %v2435_v35  ;;  %v2536_v35 = vld [vmem:[#allocation2 + $0x20c] ss:$16 sps:$4 sm:$0xff]  }
  0x6c   :  { %1388 = vmatpush1.bf16.msra.mxu1 %v2438_v36  ;;  %1346 = vmatprep.subr.bf16.mxu0 %v2443_v37  ;;  %v2539_v36 = vld [vmem:[#allocation2 + $0x40c] ss:$16 sps:$4 sm:$0xff]   ;;  %v2534_v37 = vld [vmem:[#allocation2 + $0x208] ss:$16 sps:$4 sm:$0xff]  }
  0x6d   :  { %1389 = vmatprep.subr.bf16.mxu1 %v2446_v38  ;;  %v2537_v38 = vld [vmem:[#allocation2 + $0x408] ss:$16 sps:$4 sm:$0xff]  }
  0x6f   :  { %1347 = vmatpush2.bf16.msra.mxu0 %v2441_v39  ;;  %v2542_v39 = vld [vmem:[#allocation2 + $0x3ec] ss:$16 sps:$4 sm:$0xff]  }
  0x70   :  { %1390 = vmatpush2.bf16.msra.mxu1 %v2444_v40  ;;  %1348 = vmatprep.subr.bf16.mxu0 %v2449_v41  ;;  %v2545_v40 = vld [vmem:[#allocation2 + $0x5ec] ss:$16 sps:$4 sm:$0xff]   ;;  %v2540_v41 = vld [vmem:[#allocation2 + $0x3e8] ss:$16 sps:$4 sm:$0xff]  }
  0x71   :  { %1391 = vmatprep.subr.bf16.mxu1 %v2452_v42  ;;  %v2543_v42 = vld [vmem:[#allocation2 + $0x5e8] ss:$16 sps:$4 sm:$0xff]  }
  0x73   :  { %1349 = vmatpush2.bf16.msra.mxu0 %v2447_v43  ;;  %v2548_v43 = vld [vmem:[#allocation2 + $0x3cc] ss:$16 sps:$4 sm:$0xff]  }
  0x74   :  { %1392 = vmatpush2.bf16.msra.mxu1 %v2450_v44  ;;  %1350 = vmatprep.subr.bf16.mxu0 %v2455_v45  ;;  %v2551_v44 = vld [vmem:[#allocation2 + $0x5cc] ss:$16 sps:$4 sm:$0xff]   ;;  %v2546_v45 = vld [vmem:[#allocation2 + $0x3c8] ss:$16 sps:$4 sm:$0xff]  }
  0x75   :  { %1393 = vmatprep.subr.bf16.mxu1 %v2458_v46  ;;  %v2549_v46 = vld [vmem:[#allocation2 + $0x5c8] ss:$16 sps:$4 sm:$0xff]  }
  0x77   :  { %1351 = vmatpush2.bf16.msra.mxu0 %v2453_v47  ;;  %v2554_v47 = vld [vmem:[#allocation2 + $0x3ac] ss:$16 sps:$4 sm:$0xff]  }
  0x78   :  { %1394 = vmatpush2.bf16.msra.mxu1 %v2456_v48  ;;  %1352 = vmatprep.subr.bf16.mxu0 %v2461_v49  ;;  %v2557_v48 = vld [vmem:[#allocation2 + $0x5ac] ss:$16 sps:$4 sm:$0xff]   ;;  %v2552_v49 = vld [vmem:[#allocation2 + $0x3a8] ss:$16 sps:$4 sm:$0xff]  }
  0x79   :  { %1395 = vmatprep.subr.bf16.mxu1 %v2464_v50  ;;  %v2555_v50 = vld [vmem:[#allocation2 + $0x5a8] ss:$16 sps:$4 sm:$0xff]  }
  0x7b   :  { %1353 = vmatpush2.bf16.msra.mxu0 %v2459_v52  ;;  %v2560_v52 = vld [vmem:[#allocation2 + $0x38c] ss:$16 sps:$4 sm:$0xff]  }
  0x7c   :  { %1396 = vmatpush2.bf16.msra.mxu1 %v2462_v53  ;;  %1354 = vmatprep.subr.bf16.mxu0 %v2467_v54  ;;  %v2563_v53 = vld [vmem:[#allocation2 + $0x58c] ss:$16 sps:$4 sm:$0xff]   ;;  %v2558_v54 = vld [vmem:[#allocation2 + $0x388] ss:$16 sps:$4 sm:$0xff]  }
  0x7d   :  { %1397 = vmatprep.subr.bf16.mxu1 %v2470_v55  ;;  %v2561_v55 = vld [vmem:[#allocation2 + $0x588] ss:$16 sps:$4 sm:$0xff]  }
  0x7f   :  { %1355 = vmatpush2.bf16.msra.mxu0 %v2465_v56  ;;  %v2566_v56 = vld [vmem:[#allocation2 + $0x36c] ss:$16 sps:$4 sm:$0xff]  }
  0x80   :  { %1398 = vmatpush2.bf16.msra.mxu1 %v2468_v57  ;;  %1356 = vmatprep.subr.bf16.mxu0 %v2473_v58  ;;  %v2569_v57 = vld [vmem:[#allocation2 + $0x56c] ss:$16 sps:$4 sm:$0xff]   ;;  %v2564_v58 = vld [vmem:[#allocation2 + $0x368] ss:$16 sps:$4 sm:$0xff]  }
  0x81   :  { %1399 = vmatprep.subr.bf16.mxu1 %v2476_v59  ;;  %v2567_v59 = vld [vmem:[#allocation2 + $0x568] ss:$16 sps:$4 sm:$0xff]  }
  0x83   :  { %1357 = vmatpush2.bf16.msra.mxu0 %v2471_v60  ;;  %v2572_v60 = vld [vmem:[#allocation2 + $0x34c] ss:$16 sps:$4 sm:$0xff]  }
  0x84   :  { %1400 = vmatpush2.bf16.msra.mxu1 %v2474_v61  ;;  %1358 = vmatprep.subr.bf16.mxu0 %v2479_v62  ;;  %v2575_v61 = vld [vmem:[#allocation2 + $0x54c] ss:$16 sps:$4 sm:$0xff]   ;;  %v2570_v62 = vld [vmem:[#allocation2 + $0x348] ss:$16 sps:$4 sm:$0xff]  }
  0x85   :  { %1401 = vmatprep.subr.bf16.mxu1 %v2482_v63  ;;  %v2573_v63 = vld [vmem:[#allocation2 + $0x548] ss:$16 sps:$4 sm:$0xff]  }
  0x87   :  { %1359 = vmatpush2.bf16.msra.mxu0 %v2477_v0  ;;  %v2578_v0 = vld [vmem:[#allocation2 + $0x32c] ss:$16 sps:$4 sm:$0xff]  }
  0x88   :  { %1402 = vmatpush2.bf16.msra.mxu1 %v2480_v1  ;;  %1360 = vmatprep.subr.bf16.mxu0 %v2485_v2  ;;  %v2581_v1 = vld [vmem:[#allocation2 + $0x52c] ss:$16 sps:$4 sm:$0xff]   ;;  %v2576_v2 = vld [vmem:[#allocation2 + $0x328] ss:$16 sps:$4 sm:$0xff]  }
  0x89   :  { %1403 = vmatprep.subr.bf16.mxu1 %v2488_v3  ;;  %v2579_v3 = vld [vmem:[#allocation2 + $0x528] ss:$16 sps:$4 sm:$0xff]  }
  0x8b   :  { %1361 = vmatpush2.bf16.msra.mxu0 %v2483_v6  ;;  %v2584_v6 = vld [vmem:[#allocation2 + $0x30c] ss:$16 sps:$4 sm:$0xff]  }
  0x8c   :  { %1404 = vmatpush2.bf16.msra.mxu1 %v2486_v7  ;;  %1416 = vmatprep.subr.bf16.mxu0 %v2494_v8  ;;  %v2587_v7 = vld [vmem:[#allocation2 + $0x50c] ss:$16 sps:$4 sm:$0xff]   ;;  %v2582_v8 = vld [vmem:[#allocation2 + $0x308] ss:$16 sps:$4 sm:$0xff]  }
  0x8d   :  { %1459 = vmatprep.subr.bf16.mxu1 %v2497_v9  ;;  %v2585_v9 = vld [vmem:[#allocation2 + $0x508] ss:$16 sps:$4 sm:$0xff]  }
  0x8e   :  { %1363 = vmatmul.mubr.bf16.vlgmr.msra.gmra.mxu0 %v2772_v10 }
  0x8f   :  { %1406 = vmatmul.mubr.bf16.vlgmr.msra.gmra.mxu1 %v2754_v4  ;;  %1417 = vmatpush1.bf16.msra.mxu0 %v2492_v11  ;;  %v2510_v4 = vld [vmem:[#allocation2 + $0x288] ss:$16 sps:$4 sm:$0xff]   ;;  %v2590_v11 = vld [vmem:[%s3001_s3 + $0x74] ss:$8 sps:$4 sm:$0xff]  }
  0x90   :  { %1460 = vmatpush1.bf16.msra.mxu1 %v2495_v12  ;;  %1418 = vmatprep.subr.bf16.mxu0 %v2500_v13  ;;  %v2588_v12 = vld [vmem:[%s3001_s3 + $0x70] ss:$8 sps:$4 sm:$0xff]   ;;  %v2593_v13 = vld [vmem:[%s3001_s3 + $0x64] ss:$8 sps:$4 sm:$0xff]  }
  0x91   :  { %1461 = vmatprep.subr.bf16.mxu1 %v2503_v14  ;;  %1448 = vmatprep.mubr.bf16.mxu0 %v2748_v51  ;;  %v2519_v51 = vld [vmem:[#allocation2 + $0x468] ss:$16 sps:$4 sm:$0xff]  }
  0x92   :  { %1491 = vmatprep.mubr.bf16.mxu1 %v2766_v34  ;;  %v2531_v34 = vld [vmem:[#allocation2 + $0x428] ss:$16 sps:$4 sm:$0xff]  }
  0x93   :  { %1419 = vmatpush1.bf16.msra.mxu0 %v2498_v15  ;;  %v2591_v14 = vld [vmem:[%s3001_s3 + $0x60] ss:$8 sps:$4 sm:$0xff]   ;;  %v2596_v15 = vld [vmem:[%s3001_s3 + $0x54] ss:$8 sps:$4 sm:$0xff]  }
  0x94   :  { %1462 = vmatpush1.bf16.msra.mxu1 %v2501_v16  ;;  %1420 = vmatprep.subr.bf16.mxu0 %v2506_v17  ;;  %v2594_v16 = vld [vmem:[%s3001_s3 + $0x50] ss:$8 sps:$4 sm:$0xff]   ;;  %v2602_v17 = vld [vmem:[%s3001_s3 + $0x34] ss:$8 sps:$4 sm:$0xff]  }
  0x95   :  { %1463 = vmatprep.subr.bf16.mxu1 %v2509_v18  ;;  %v2600_v18 = vld [vmem:[%s3001_s3 + $0x30] ss:$8 sps:$4 sm:$0xff]  }
  0x97   :  { %1421 = vmatpush1.bf16.msra.mxu0 %v2504_v19  ;;  %v2605_v19 = vld [vmem:[%s3001_s3 + $0x24] ss:$8 sps:$4 sm:$0xff]  }
  0x98   :  { %1464 = vmatpush1.bf16.msra.mxu1 %v2507_v20  ;;  %1422 = vmatprep.subr.bf16.mxu0 %v2512_v21  ;;  %v2636_v20 = vld [vmem:[%s3001_s3 + $0x170] ss:$8 sps:$4 sm:$0xff]   ;;  %v2638_v21 = vld [vmem:[%s3001_s3 + $0x174] ss:$8 sps:$4 sm:$0xff]  }
  0x99   :  { %1465 = vmatprep.subr.bf16.mxu1 %v2515_v22  ;;  %v2641_v22 = vld [vmem:[%s3001_s3 + $0x164] ss:$8 sps:$4 sm:$0xff]  }
  0x9b   :  { %1423 = vmatpush1.bf16.msra.mxu0 %v2510_v4  ;;  %v2603_v4 = vld [vmem:[%s3001_s3 + $0x20] ss:$8 sps:$4 sm:$0xff]  }
  0x9c   :  { %1466 = vmatpush1.bf16.msra.mxu1 %v2513_v23  ;;  %1424 = vmatprep.subr.bf16.mxu0 %v2518_v24  ;;  %v2639_v23 = vld [vmem:[%s3001_s3 + $0x160] ss:$8 sps:$4 sm:$0xff]   ;;  %v2608_v24 = vld [vmem:[%s3001_s3 + $0x14] ss:$8 sps:$4 sm:$0xff]  }
  0x9d   :  { %1467 = vmatprep.subr.bf16.mxu1 %v2521_v25  ;;  %v2644_v25 = vld [vmem:[%s3001_s3 + $0x154] ss:$8 sps:$4 sm:$0xff]  }
  0x9f   :  { %1425 = vmatpush1.bf16.msra.mxu0 %v2516_v26  ;;  %v2606_v26 = vld [vmem:[%s3001_s3 + $0x10] ss:$8 sps:$4 sm:$0xff]  }
  0xa0   :  { %1468 = vmatpush1.bf16.msra.mxu1 %v2519_v51  ;;  %1426 = vmatprep.subr.bf16.mxu0 %v2524_v27  ;;  %v2642_v51 = vld [vmem:[%s3001_s3 + $0x150] ss:$8 sps:$4 sm:$0xff]   ;;  %v2611_v27 = vld [vmem:[%s3001_s3 + $0x4] ss:$8 sps:$4 sm:$0xff]  }
  0xa1   :  { %1469 = vmatprep.subr.bf16.mxu1 %v2527_v28  ;;  %v2647_v28 = vld [vmem:[%s3001_s3 + $0x144] ss:$8 sps:$4 sm:$0xff]  }
  0xa3   :  { %1427 = vmatpush1.bf16.msra.mxu0 %v2522_v29  ;;  %v2609_v29 = vld [vmem:[%s3001_s3] ss:$8 sps:$4 sm:$0xff]  }
  0xa4   :  { %1470 = vmatpush1.bf16.msra.mxu1 %v2525_v30  ;;  %1428 = vmatprep.subr.bf16.mxu0 %v2530_v31  ;;  %v2645_v30 = vld [vmem:[%s3001_s3 + $0x140] ss:$8 sps:$4 sm:$0xff]   ;;  %v2614_v31 = vld [vmem:[%s3001_s3 + $0xf4] ss:$8 sps:$4 sm:$0xff]  }
  0xa5   :  { %1471 = vmatprep.subr.bf16.mxu1 %v2533_v32  ;;  %v2650_v32 = vld [vmem:[%s3001_s3 + $0x134] ss:$8 sps:$4 sm:$0xff]  }
  0xa7   :  { %1429 = vmatpush1.bf16.msra.mxu0 %v2528_v33  ;;  %v2612_v33 = vld [vmem:[%s3001_s3 + $0xf0] ss:$8 sps:$4 sm:$0xff]  }
  0xa8   :  { %1472 = vmatpush1.bf16.msra.mxu1 %v2531_v34  ;;  %1430 = vmatprep.subr.bf16.mxu0 %v2536_v35  ;;  %v2648_v34 = vld [vmem:[%s3001_s3 + $0x130] ss:$8 sps:$4 sm:$0xff]   ;;  %v2617_v35 = vld [vmem:[%s3001_s3 + $0xe4] ss:$8 sps:$4 sm:$0xff]  }
  0xa9   :  { %1473 = vmatprep.subr.bf16.mxu1 %v2539_v36  ;;  %v2653_v36 = vld [vmem:[%s3001_s3 + $0x124] ss:$8 sps:$4 sm:$0xff]  }
  0xab   :  { %1431 = vmatpush1.bf16.msra.mxu0 %v2534_v37  ;;  %v2615_v37 = vld [vmem:[%s3001_s3 + $0xe0] ss:$8 sps:$4 sm:$0xff]  }
  0xac   :  { %1474 = vmatpush1.bf16.msra.mxu1 %v2537_v38  ;;  %1432 = vmatprep.subr.bf16.mxu0 %v2542_v39  ;;  %v2651_v38 = vld [vmem:[%s3001_s3 + $0x120] ss:$8 sps:$4 sm:$0xff]   ;;  %v2620_v39 = vld [vmem:[%s3001_s3 + $0xd4] ss:$8 sps:$4 sm:$0xff]  }
  0xad   :  { %1475 = vmatprep.subr.bf16.mxu1 %v2545_v40  ;;  %v2656_v40 = vld [vmem:[%s3001_s3 + $0x114] ss:$8 sps:$4 sm:$0xff]  }
  0xaf   :  { %1433 = vmatpush2.bf16.msra.mxu0 %v2540_v41  ;;  %v2618_v41 = vld [vmem:[%s3001_s3 + $0xd0] ss:$8 sps:$4 sm:$0xff]  }
  0xb0   :  { %1476 = vmatpush2.bf16.msra.mxu1 %v2543_v42  ;;  %1434 = vmatprep.subr.bf16.mxu0 %v2548_v43  ;;  %v2654_v42 = vld [vmem:[%s3001_s3 + $0x110] ss:$8 sps:$4 sm:$0xff]   ;;  %v2623_v43 = vld [vmem:[%s3001_s3 + $0xc4] ss:$8 sps:$4 sm:$0xff]  }
  0xb1   :  { %1477 = vmatprep.subr.bf16.mxu1 %v2551_v44  ;;  %v2659_v44 = vld [vmem:[%s3001_s3 + $0x104] ss:$8 sps:$4 sm:$0xff]  }
  0xb3   :  { %1435 = vmatpush2.bf16.msra.mxu0 %v2546_v45  ;;  %v2621_v45 = vld [vmem:[%s3001_s3 + $0xc0] ss:$8 sps:$4 sm:$0xff]  }
  0xb4   :  { %1478 = vmatpush2.bf16.msra.mxu1 %v2549_v46  ;;  %1436 = vmatprep.subr.bf16.mxu0 %v2554_v47  ;;  %v2657_v46 = vld [vmem:[%s3001_s3 + $0x100] ss:$8 sps:$4 sm:$0xff]   ;;  %v2626_v47 = vld [vmem:[%s3001_s3 + $0xb4] ss:$8 sps:$4 sm:$0xff]  }
  0xb5   :  { %1479 = vmatprep.subr.bf16.mxu1 %v2557_v48  ;;  %v2662_v48 = vld [vmem:[%s3001_s3 + $0x1f4] ss:$8 sps:$4 sm:$0xff]  }
  0xb7   :  { %1437 = vmatpush2.bf16.msra.mxu0 %v2552_v49  ;;  %v2624_v49 = vld [vmem:[%s3001_s3 + $0xb0] ss:$8 sps:$4 sm:$0xff]  }
  0xb8   :  { %1480 = vmatpush2.bf16.msra.mxu1 %v2555_v50  ;;  %1438 = vmatprep.subr.bf16.mxu0 %v2560_v52  ;;  %v2660_v50 = vld [vmem:[%s3001_s3 + $0x1f0] ss:$8 sps:$4 sm:$0xff]   ;;  %v2629_v52 = vld [vmem:[%s3001_s3 + $0xa4] ss:$8 sps:$4 sm:$0xff]  }
  0xb9   :  { %1481 = vmatprep.subr.bf16.mxu1 %v2563_v53  ;;  %v2665_v53 = vld [vmem:[%s3001_s3 + $0x1e4] ss:$8 sps:$4 sm:$0xff]  }
  0xbb   :  { %1439 = vmatpush2.bf16.msra.mxu0 %v2558_v54  ;;  %v2627_v54 = vld [vmem:[%s3001_s3 + $0xa0] ss:$8 sps:$4 sm:$0xff]  }
  0xbc   :  { %1482 = vmatpush2.bf16.msra.mxu1 %v2561_v55  ;;  %1440 = vmatprep.subr.bf16.mxu0 %v2566_v56  ;;  %v2663_v55 = vld [vmem:[%s3001_s3 + $0x1e0] ss:$8 sps:$4 sm:$0xff]   ;;  %v2632_v56 = vld [vmem:[%s3001_s3 + $0x94] ss:$8 sps:$4 sm:$0xff]  }
  0xbd   :  { %1483 = vmatprep.subr.bf16.mxu1 %v2569_v57  ;;  %v2668_v57 = vld [vmem:[%s3001_s3 + $0x1d4] ss:$8 sps:$4 sm:$0xff]  }
  0xbf   :  { %1441 = vmatpush2.bf16.msra.mxu0 %v2564_v58  ;;  %v2630_v58 = vld [vmem:[%s3001_s3 + $0x90] ss:$8 sps:$4 sm:$0xff]  }
  0xc0   :  { %1484 = vmatpush2.bf16.msra.mxu1 %v2567_v59  ;;  %1442 = vmatprep.subr.bf16.mxu0 %v2572_v60  ;;  %v2666_v59 = vld [vmem:[%s3001_s3 + $0x1d0] ss:$8 sps:$4 sm:$0xff]   ;;  %v2635_v60 = vld [vmem:[%s3001_s3 + $0x84] ss:$8 sps:$4 sm:$0xff]  }
  0xc1   :  { %1485 = vmatprep.subr.bf16.mxu1 %v2575_v61  ;;  %v2671_v61 = vld [vmem:[%s3001_s3 + $0x1c4] ss:$8 sps:$4 sm:$0xff]  }
  0xc3   :  { %1443 = vmatpush2.bf16.msra.mxu0 %v2570_v62  ;;  %v2633_v62 = vld [vmem:[%s3001_s3 + $0x80] ss:$8 sps:$4 sm:$0xff]  }
  0xc4   :  { %1486 = vmatpush2.bf16.msra.mxu1 %v2573_v63  ;;  %1444 = vmatprep.subr.bf16.mxu0 %v2578_v0  ;;  %v2669_v63 = vld [vmem:[%s3001_s3 + $0x1c0] ss:$8 sps:$4 sm:$0xff]   ;;  %v2674_v0 = vld [vmem:[%s3001_s3 + $0x1b4] ss:$8 sps:$4 sm:$0xff]  }
  0xc5   :  { %1487 = vmatprep.subr.bf16.mxu1 %v2581_v1  ;;  %v2672_v1 = vld [vmem:[%s3001_s3 + $0x1b0] ss:$8 sps:$4 sm:$0xff]  }
  0xc7   :  { %1445 = vmatpush2.bf16.msra.mxu0 %v2576_v2  ;;  %v2677_v2 = vld [vmem:[%s3001_s3 + $0x1a4] ss:$8 sps:$4 sm:$0xff]  }
  0xc8   :  { %1488 = vmatpush2.bf16.msra.mxu1 %v2579_v3  ;;  %1446 = vmatprep.subr.bf16.mxu0 %v2584_v6  ;;  %v2675_v3 = vld [vmem:[%s3001_s3 + $0x1a0] ss:$8 sps:$4 sm:$0xff]   ;;  %v2680_v6 = vld [vmem:[%s3001_s3 + $0x194] ss:$8 sps:$4 sm:$0xff]  }
  0xc9   :  { %1489 = vmatprep.subr.bf16.mxu1 %v2587_v7  ;;  %v2678_v7 = vld [vmem:[%s3001_s3 + $0x190] ss:$8 sps:$4 sm:$0xff]  }
  0xcb   :  { %1447 = vmatpush2.bf16.msra.mxu0 %v2582_v8  ;;  %v2683_v8 = vld [vmem:[%s3001_s3 + $0x184] ss:$8 sps:$4 sm:$0xff]  }
  0xcc   :  { %1490 = vmatpush2.bf16.msra.mxu1 %v2585_v9  ;;  %1910 = vmatprep.subr.bf16.mxu0 %v2590_v11  ;;  %v2681_v9 = vld [vmem:[%s3001_s3 + $0x180] ss:$8 sps:$4 sm:$0xff]   ;;  %v234_v11 = vlaneseq }
  0xcd   :  { %1953 = vmatprep.subr.bf16.mxu1 %v2638_v21 }
  0xce   :  { %1449 = vmatmul.mubr.bf16.vlgmr.msra.gmra.mxu0 %v2759_v5  ;;  %v2599_v5 = vld [vmem:[%s3001_s3 + $0x44] ss:$8 sps:$4 sm:$0xff]  }
  0xcf   :  { %1492 = vmatmul.mubr.bf16.vlgmr.msra.gmra.mxu1 %v2772_v10  ;;  %1911 = vmatpush1.bf16.msra.mxu0 %v2588_v12  ;;  %v2597_v10 = vld [vmem:[%s3001_s3 + $0x40] ss:$8 sps:$4 sm:$0xff]  }
  0xd0   :  { %1912 = vmatprep.subr.bf16.mxu0 %v2593_v13  ;;  %1954 = vmatpush1.bf16.msra.mxu1 %v2636_v20  ;;  %v2972_v13 = vshrl.u32 %v234_v11, 7 }
  0xd1   :  { %1955 = vmatprep.subr.bf16.mxu1 %v2641_v22 }
  0xd3   :  { %1913 = vmatpush1.bf16.msra.mxu0 %v2591_v14 }
  0xd4   :  { %1914 = vmatprep.subr.bf16.mxu0 %v2596_v15  ;;  %1956 = vmatpush1.bf16.msra.mxu1 %v2639_v23  ;;  %v240_v15 = vsub.s32 1, %v2972_v13 }
  0xd5   :  { %1957 = vmatprep.subr.bf16.mxu1 %v2644_v25 }
  0xd7   :  { %1915 = vmatpush1.bf16.msra.mxu0 %v2594_v16  ;;  %v232_v16 = vld [vmem:[%s3000_s2] sm:$0xf] }
  0xd8   :  { %1916 = vmatprep.subr.bf16.mxu0 %v2599_v5  ;;  %1958 = vmatpush1.bf16.msra.mxu1 %v2642_v51  ;;  %v236_v5 = vsub.s32 0, %v2972_v13 }
  0xd9   :  { %1959 = vmatprep.subr.bf16.mxu1 %v2647_v28 }
  0xdb   :  { %1917 = vmatpush1.bf16.msra.mxu0 %v2597_v10 }
  0xdc   :  { %1918 = vmatprep.subr.bf16.mxu0 %v2602_v17  ;;  %1960 = vmatpush1.bf16.msra.mxu1 %v2645_v30 }
  0xdd   :  { %1961 = vmatprep.subr.bf16.mxu1 %v2650_v32 }
  0xdf   :  { %1919 = vmatpush1.bf16.msra.mxu0 %v2600_v18  ;;  %v241_v18 = vrot.slane %v232_v16, %v240_v15 }
  0xe0   :  { %1920 = vmatprep.subr.bf16.mxu0 %v2605_v19  ;;  %1962 = vmatpush1.bf16.msra.mxu1 %v2648_v34  ;;  %v237_v19 = vrot.slane %v232_v16, %v236_v5 }
  0xe1   :  { %1963 = vmatprep.subr.bf16.mxu1 %v2653_v36 }
  0xe3   :  { %1921 = vmatpush1.bf16.msra.mxu0 %v2603_v4 }
  0xe4   :  { %1922 = vmatprep.subr.bf16.mxu0 %v2608_v24  ;;  %1964 = vmatpush1.bf16.msra.mxu1 %v2651_v38 }
  0xe5   :  { %1965 = vmatprep.subr.bf16.mxu1 %v2656_v40 }
  0xe7   :  { %1923 = vmatpush1.bf16.msra.mxu0 %v2606_v26 }
  0xe8   :  { %1924 = vmatprep.subr.bf16.mxu0 %v2611_v27  ;;  %1966 = vmatpush1.bf16.msra.mxu1 %v2654_v42 }
  0xe9   :  { %1967 = vmatprep.subr.bf16.mxu1 %v2659_v44 }
  0xeb   :  { %1925 = vmatpush1.bf16.msra.mxu0 %v2609_v29 }
  0xec   :  { %1926 = vmatprep.subr.bf16.mxu0 %v2614_v31  ;;  %1968 = vmatpush1.bf16.msra.mxu1 %v2657_v46  ;;  %v248_v46 = vsub.s32 3, %v2972_v13 }
  0xed   :  { %1969 = vmatprep.subr.bf16.mxu1 %v2662_v48 }
  0xef   :  { %1927 = vmatpush2.bf16.msra.mxu0 %v2612_v33 }
  0xf0   :  { %1928 = vmatprep.subr.bf16.mxu0 %v2617_v35  ;;  %1970 = vmatpush2.bf16.msra.mxu1 %v2660_v50 }
  0xf1   :  { %1971 = vmatprep.subr.bf16.mxu1 %v2665_v53 }
  0xf3   :  { %1929 = vmatpush2.bf16.msra.mxu0 %v2615_v37 }
  0xf4   :  { %1930 = vmatprep.subr.bf16.mxu0 %v2620_v39  ;;  %1972 = vmatpush2.bf16.msra.mxu1 %v2663_v55 }
  0xf5   :  { %1973 = vmatprep.subr.bf16.mxu1 %v2668_v57 }
  0xf7   :  { %1931 = vmatpush2.bf16.msra.mxu0 %v2618_v41 }
  0xf8   :  { %1932 = vmatprep.subr.bf16.mxu0 %v2623_v43  ;;  %1974 = vmatpush2.bf16.msra.mxu1 %v2666_v59 }
  0xf9   :  { %1975 = vmatprep.subr.bf16.mxu1 %v2671_v61 }
  0xfb   :  { %1933 = vmatpush2.bf16.msra.mxu0 %v2621_v45 }
  0xfc   :  { %1934 = vmatprep.subr.bf16.mxu0 %v2626_v47  ;;  %1976 = vmatpush2.bf16.msra.mxu1 %v2669_v63  ;;  %v244_v47 = vsub.s32 2, %v2972_v13 }
  0xfd   :  { %1977 = vmatprep.subr.bf16.mxu1 %v2674_v0 }
  0xfe   :  { %v245_v50 = vrot.slane %v232_v16, %v244_v47 }
  0xff   :  { %1935 = vmatpush2.bf16.msra.mxu0 %v2624_v49  ;;  %v249_v49 = vrot.slane %v232_v16, %v248_v46 }
 0x100   :  { %1936 = vmatprep.subr.bf16.mxu0 %v2629_v52  ;;  %1978 = vmatpush2.bf16.msra.mxu1 %v2672_v1 }
 0x101   :  { %1979 = vmatprep.subr.bf16.mxu1 %v2677_v2 }
 0x103   :  { %1937 = vmatpush2.bf16.msra.mxu0 %v2627_v54 }
 0x104   :  { %1938 = vmatprep.subr.bf16.mxu0 %v2632_v56  ;;  %1980 = vmatpush2.bf16.msra.mxu1 %v2675_v3 }
 0x105   :  { %1981 = vmatprep.subr.bf16.mxu1 %v2680_v6 }
 0x107   :  { %1939 = vmatpush2.bf16.msra.mxu0 %v2630_v58 }
 0x108   :  { %1940 = vmatprep.subr.bf16.mxu0 %v2635_v60  ;;  %1982 = vmatpush2.bf16.msra.mxu1 %v2678_v7 }
 0x109   :  { %1983 = vmatprep.subr.bf16.mxu1 %v2683_v8 }
 0x10b   :  { %1941 = vmatpush2.bf16.msra.mxu0 %v2633_v62 }
 0x10c   :  { %1984 = vmatpush2.bf16.msra.mxu1 %v2681_v9 }
 0x10e   :  { %v1278_v12 = vpop.f32.mrf.mxu0 }
 0x10f   :  { %v1321_v10 = vpop.f32.mrf.mxu1  ;;  %v1279_v23 = vadd.f32 %v1278_v12, %v237_v19 }
 0x110   :  { %v1280_v14 = vpop.f32.mrf.mxu0 }
 0x111   :  { %v1323_v20 = vpop.f32.mrf.mxu1  ;;  %v1281_v22 = vadd.f32 %v1280_v14, %v241_v18  ;;  %v1322_v29 = vadd.f32 %v1321_v10, %v1279_v23 }
 0x112   :  { %v1282_v17 = vpop.f32.mrf.mxu0 }
 0x113   :  { %v1283_v4 = vadd.f32 %v1282_v17, %v237_v19  ;;  %v1325_v24 = vpop.f32.mrf.mxu1  ;;  %v1324_v27 = vadd.f32 %v1323_v20, %v1281_v22  ;;  %v1578_v20 = vld [vmem:[%s3002_s4] sm:$0x3] }
 0x114   :  { %v1284_v21 = vpop.f32.mrf.mxu0  ;;  %v1583_v22 = vrot.slane %v1578_v20, %v236_v5 }
 0x115   :  { %v1285_v26 = vadd.f32 %v1284_v21, %v241_v18  ;;  %v1326_v28 = vadd.f32 %v1325_v24, %v1283_v4  ;;  %v1327_v30 = vpop.f32.mrf.mxu1  ;;  %v1587_v4 = vrot.slane %v1578_v20, %v240_v15 }
 0x117   :  { %v1328_v32 = vadd.f32 %v1327_v30, %v1285_v26 }
 0x14e   :  { %v1364_v25 = vpop.f32.mrf.mxu0 }
 0x14f   :  { %v1365_v35 = vadd.f32 %v1364_v25, %v1322_v29  ;;  %v1407_v44 = vpop.f32.mrf.mxu1 }
 0x150   :  { %v1366_v51 = vpop.f32.mrf.mxu0  ;;  %v1408_v56 = vadd.f32 %v1407_v44, %v245_v50 }
 0x151   :  { %v1367_v33 = vadd.f32 %v1366_v51, %v1324_v27  ;;  %v1502_v41 = vmax.f32 %v1365_v35, 0.0  ;;  %v1409_v45 = vpop.f32.mrf.mxu1 }
 0x152   :  { %v1368_v31 = vpop.f32.mrf.mxu0  ;;  %v1410_v55 = vadd.f32 %v1409_v45, %v249_v49 }
 0x153   :  { %v1369_v34 = vadd.f32 %v1368_v31, %v1326_v28  ;;  %v1503_v39 = vmax.f32 %v1367_v33, 0.0  ;;  %v1411_v48 = vpop.f32.mrf.mxu1 }
 0x154   :  { %v1370_v36 = vpop.f32.mrf.mxu0  ;;  %v1412_v59 = vadd.f32 %v1411_v48, %v245_v50 }
 0x155   :  { %v1371_v37 = vadd.f32 %v1370_v36, %v1328_v32  ;;  %v1506_v38 = vmax.f32 %v1369_v34, 0.0  ;;  %v1413_v52 = vpop.f32.mrf.mxu1 }
 0x156   :  { %v1414_v0 = vadd.f32 %v1413_v52, %v249_v49 }
 0x157   :  { %v1507_v40 = vmax.f32 %v1371_v37, 0.0  ;;  %v1510_v43 = vpack.c.bf16 %v1506_v38, %v1502_v41 }
 0x159   :  { %v1511_v42 = vpack.c.bf16 %v1507_v40, %v1503_v39 }
 0x15b   :  { %1942 = vmatprep.mubr.bf16.mxu0 %v1511_v42 }
 0x15c   :  { %1943 = vmatmul.mubr.bf16.vlgmr.msra.gmra.mxu0 %v1510_v43 }
 0x18e   :  { %v1450_v53 = vpop.f32.mrf.mxu0 }
 0x18f   :  { %v1493_v54 = vpop.f32.mrf.mxu1  ;;  %v1451_v61 = vadd.f32 %v1450_v53, %v1408_v56 }
 0x190   :  { %v1452_v57 = vpop.f32.mrf.mxu0 }
 0x191   :  { %v1495_v58 = vpop.f32.mrf.mxu1  ;;  %v1453_v60 = vadd.f32 %v1452_v57, %v1410_v55  ;;  %v1494_v8 = vadd.f32 %v1493_v54, %v1451_v61 }
 0x192   :  { %v1454_v62 = vpop.f32.mrf.mxu0 }
 0x193   :  { %v1497_v63 = vpop.f32.mrf.mxu1  ;;  %v1455_v1 = vadd.f32 %v1454_v62, %v1412_v59  ;;  %v1496_v3 = vadd.f32 %v1495_v58, %v1453_v60  ;;  %v1504_v10 = vmax.f32 %v1494_v8, 0.0 }
 0x194   :  { %v1456_v2 = vpop.f32.mrf.mxu0 }
 0x195   :  { %v1498_v6 = vadd.f32 %v1497_v63, %v1455_v1  ;;  %v1457_v7 = vadd.f32 %v1456_v2, %v1414_v0  ;;  %v1499_v9 = vpop.f32.mrf.mxu1  ;;  %v1505_v14 = vmax.f32 %v1496_v3, 0.0 }
 0x197   :  { %v1500_v11 = vadd.f32 %v1499_v9, %v1457_v7  ;;  %v1508_v12 = vmax.f32 %v1498_v6, 0.0 }
 0x199   :  { %v1509_v16 = vmax.f32 %v1500_v11, 0.0  ;;  %v1512_v18 = vpack.c.bf16 %v1508_v12, %v1504_v10 }
 0x19b   :  { %v1513_v17 = vpack.c.bf16 %v1509_v16, %v1505_v14 }
 0x19d   :  { %1985 = vmatprep.mubr.bf16.mxu1 %v1513_v17 }
 0x19e   :  { %1986 = vmatmul.mubr.bf16.vlgmr.msra.gmra.mxu1 %v1512_v18 }
 0x21c   :  { %v1944_v19 = vpop.f32.mrf.mxu0 }
 0x21d   :  { %v1945_v24 = vadd.f32 %v1944_v19, %v1583_v22 }
 0x21e   :  { %v1946_v21 = vpop.f32.mrf.mxu0 }
 0x21f   :  { %v1947_v26 = vadd.f32 %v1946_v21, %v1587_v4 }
 0x220   :  { %v1948_v23 = vpop.f32.mrf.mxu0 }
 0x221   :  { %v1949_v29 = vadd.f32 %v1948_v23, %v1583_v22 }
 0x222   :  { %v1950_v27 = vpop.f32.mrf.mxu0 }
 0x223   :  { %v1951_v32 = vadd.f32 %v1950_v27, %v1587_v4 }
 0x25e   :  { %v1987_v25 = vpop.f32.mrf.mxu1 }
 0x25f   :  { %v1988_v51 = vadd.f32 %v1987_v25, %v1945_v24 }
 0x260   :  { %v1989_v28 = vpop.f32.mrf.mxu1 }
 0x261   :  { %v1990_v30 = vadd.f32 %v1989_v28, %v1947_v26  ;;  %v1996_v33 = vmax.f32 %v1988_v51, 0.0 }
 0x262   :  { %v1991_v31 = vpop.f32.mrf.mxu1 }
 0x263   :  { %v1997_v34 = vmax.f32 %v1990_v30, 0.0  ;;  %v1992_v35 = vadd.f32 %v1991_v31, %v1949_v29 }
 0x264   :  { %v1993_v5 = vpop.f32.mrf.mxu1 }
 0x265   :  { %v2286_v13 = vpack.c.bf16 %v1997_v34, %v1996_v33  ;;  %v1994_v15 = vadd.f32 %v1993_v5, %v1951_v32  ;;  %v1998_v36 = vmax.f32 %v1992_v35, 0.0 }
 0x267   :  { %2015 = vst.msk [vmem:[%s3003_s5] sm:$0xff] %vm2014_vm2, %v2286_v13  ;;  %v1999_v37 = vmax.f32 %v1994_v15, 0.0 }
 0x269   :  { %v2287_v38 = vpack.c.bf16 %v1999_v37, %v1998_v36 }
 0x26b   :  { %2016 = vst.msk [vmem:[%s3003_s5 + $0x8] sm:$0xff] %vm2014_vm2, %v2287_v38 }
 0x26c   :  { %2021 = vsyncpa [#allocation3], 1 }

</bundles_post_ra>
